<compile_context>
chip_gen: v7x
topology: tpu7x:2x2x1
jax: 0.10.0
libtpu: 0.0.40
codegen_flags: <defaults>
</compile_context>

<pallas_src>
import jax
import jax.numpy as jnp
from jax import lax
from jax.experimental import pallas as pl
from jax.experimental.pallas import tpu as pltpu


def _round_up(n: int, m: int) -> int:
    return ((n + m - 1) // m) * m


def _tms_kernel(x_ref, w_ref, b_ref, out_ref):
    x = x_ref[...]                      # [TB, IP]
    w = w_ref[...]                      # [IP, HP]  (VMEM-resident across grid)
    # h = x @ W  -> [TB, HP]
    h = jnp.dot(x, w, preferred_element_type=jnp.float32)
    # z = h @ W.T -> [TB, IP], expressed as a contraction over the hidden
    # axis so Mosaic feeds the MXU directly (no materialized transpose).
    z = lax.dot_general(
        h, w,
        dimension_numbers=(((1,), (1,)), ((), ())),
        preferred_element_type=jnp.float32,
    )
    z = z + b_ref[...]                  # bias broadcast over the batch rows
    out_ref[...] = jnp.maximum(z, 0.0).astype(out_ref.dtype)


def tms_forward(x, W, b, *, block_batch: int = 256):
    """Pallas TPU implementation of TMS.forward.

    Args:
      x: [batch, input_size] float32
      W: [input_size, hidden_size] float32
      b: [input_size] float32
    Returns:
      relu(x @ W @ W.T + b): [batch, input_size] float32
    """
    batch, input_size = x.shape
    hidden_size = W.shape[1]

    # Lane-dense padding: pad feature axes to multiples of 128 (vreg lane
    # width) and batch to a multiple of the batch tile (sublane multiple of 8).
    ip = _round_up(input_size, 128)
    hp = _round_up(hidden_size, 128)
    tb = min(block_batch, _round_up(batch, 8))
    bp = _round_up(batch, tb)

    x_p = jnp.pad(x, ((0, bp - batch), (0, ip - input_size)))
    w_p = jnp.pad(W, ((0, ip - input_size), (0, hp - hidden_size)))
    b_p = jnp.pad(b, (0, ip - input_size)).reshape(1, ip)

    grid = (bp // tb,)

    out_p = pl.pallas_call(
        _tms_kernel,
        out_shape=jax.ShapeDtypeStruct((bp, ip), x.dtype),
        grid=grid,
        in_specs=[
            pl.BlockSpec((tb, ip), lambda i: (i, 0)),   # x: batch-tiled
            pl.BlockSpec((ip, hp), lambda i: (0, 0)),   # W: resident
            pl.BlockSpec((1, ip), lambda i: (0, 0)),    # b: resident
        ],
        out_specs=pl.BlockSpec((tb, ip), lambda i: (i, 0)),
        compiler_params=pltpu.CompilerParams(
            dimension_semantics=("parallel",),
        ),
    )(x_p, w_p, b_p)

    return out_p[:batch, :input_size]


def tms_reference(x, W, b):
    h = jnp.einsum('ih,bi->bh', W, x)
    z = jnp.einsum('ih,bh->bi', W, h) + b
    return jax.nn.relu(z)


if __name__ == "__main__":
    key = jax.random.PRNGKey(0)

    # Case 1: small shapes consistent with the module (cfg.input_size=32,
    # cfg.hidden_size=8, batch=8).
    batch, input_size, hidden_size = 8, 32, 8
    kx, kw, key = jax.random.split(key, 3)
    bound = 1.0 / jnp.sqrt(jnp.float32(input_size))
    W = jax.random.uniform(kw, (input_size, hidden_size), jnp.float32,
                           minval=-bound, maxval=bound)
    b = jnp.zeros((input_size,), jnp.float32)
    x = jax.random.normal(kx, (batch, input_size), jnp.float32)

    out = jax.block_until_ready(tms_forward(x, W, b))
    ref = tms_reference(x, W, b)
    assert out.shape == (batch, input_size)
    assert jnp.allclose(out, ref, atol=1e-5, rtol=1e-5), "mismatch vs reference (case 1)"

    # Case 2: ragged shapes exercising batch tiling + padding (multiple grid
    # steps, non-multiple-of-128 feature dims, non-zero bias).
    batch2, input_size2, hidden_size2 = 300, 40, 12
    kx2, kw2, kb2 = jax.random.split(key, 3)
    bound2 = 1.0 / jnp.sqrt(jnp.float32(input_size2))
    W2 = jax.random.uniform(kw2, (input_size2, hidden_size2), jnp.float32,
                            minval=-bound2, maxval=bound2)
    b2 = 0.1 * jax.random.normal(kb2, (input_size2,), jnp.float32)
    x2 = jax.random.normal(kx2, (batch2, input_size2), jnp.float32)

    out2 = jax.block_until_ready(tms_forward(x2, W2, b2, block_batch=128))
    ref2 = tms_reference(x2, W2, b2)
    assert out2.shape == (batch2, input_size2)
    assert jnp.allclose(out2, ref2, atol=1e-5, rtol=1e-5), "mismatch vs reference (case 2)"

    print("KERNEL_OK")
</pallas_src>

<mosaic_0001>
module attributes {stable_mosaic.version = 11 : i64} {
  func.func @_tms_kernel(%arg0: i32, %arg1: memref<8x128xf32, #tpu.memory_space<vmem>>, %arg2: memref<128x128xf32, #tpu.memory_space<vmem>>, %arg3: memref<1x128xf32, #tpu.memory_space<vmem>>, %arg4: memref<8x128xf32, #tpu.memory_space<vmem>>) attributes {dimension_semantics = [#tpu.dimension_semantics<parallel>], iteration_bounds = array<i64: 1>, scalar_prefetch = 0 : i64, scratch_operands = 0 : i64, tpu.core_type = #tpu.core_type<tc>, window_params = [{transform_indices = @transform_0, window_bounds = array<i64: 8, 128>}, {pipeline_mode = #tpu.pipeline_mode<synchronous>, transform_indices = @transform_1, window_bounds = array<i64: 128, 128>}, {pipeline_mode = #tpu.pipeline_mode<synchronous>, transform_indices = @transform_2, window_bounds = array<i64: 1, 128>}, {transform_indices = @transform_3, window_bounds = array<i64: 8, 128>}]} {
    %c0 = arith.constant 0 : index
    %c0_0 = arith.constant 0 : index
    %0 = vector.load %arg1[%c0, %c0_0] : memref<8x128xf32, #tpu.memory_space<vmem>>, vector<8x128xf32>
    %c0_1 = arith.constant 0 : index
    %c0_2 = arith.constant 0 : index
    %1 = vector.load %arg2[%c0_1, %c0_2] : memref<128x128xf32, #tpu.memory_space<vmem>>, vector<128x128xf32>
    %cst = arith.constant dense<0.000000e+00> : vector<8x128xf32>
    %2 = tpu.matmul %0, %1, %cst {dimension_numbers = #tpu.dot_dimension_numbers<[1], [0], [0], [1], [0, 0, 1, 1], [], []>} : vector<8x128xf32>, vector<128x128xf32>, vector<8x128xf32> -> vector<8x128xf32>
    %cst_3 = arith.constant dense<0.000000e+00> : vector<8x128xf32>
    %3 = tpu.matmul %2, %1, %cst_3 {dimension_numbers = #tpu.dot_dimension_numbers<[1], [1], [0], [0], [0, 0, 1, 0], [], []>} : vector<8x128xf32>, vector<128x128xf32>, vector<8x128xf32> -> vector<8x128xf32>
    %c0_4 = arith.constant 0 : index
    %c0_5 = arith.constant 0 : index
    %4 = vector.load %arg3[%c0_4, %c0_5] : memref<1x128xf32, #tpu.memory_space<vmem>>, vector<1x128xf32>
    %5 = vector.broadcast %4 : vector<1x128xf32> to vector<8x128xf32>
    %6 = arith.addf %3, %5 : vector<8x128xf32>
    %cst_6 = arith.constant 0.000000e+00 : f32
    %7 = vector.broadcast %cst_6 : f32 to vector<8x128xf32>
    %8 = arith.maximumf %6, %7 : vector<8x128xf32>
    %c0_7 = arith.constant 0 : index
    %c0_8 = arith.constant 0 : index
    %9 = vector.load %arg4[%c0_7, %c0_8] : memref<8x128xf32, #tpu.memory_space<vmem>>, vector<8x128xf32>
    tpu.vector_store %arg4[%c0_7, %c0_8], %8 {strides = array<i32>} : memref<8x128xf32, #tpu.memory_space<vmem>>, vector<8x128xf32>,
    return
  }
  func.func @transform_0(%arg0: i32) -> (i32, i32) {
    %c0_i32 = arith.constant 0 : i32
    %c0_i32_0 = arith.constant 0 : i32
    return %arg0, %c0_i32 : i32, i32
  }
  func.func @transform_1(%arg0: i32) -> (i32, i32) {
    %c0_i32 = arith.constant 0 : i32
    %c0_i32_0 = arith.constant 0 : i32
    %c0_i32_1 = arith.constant 0 : i32
    return %c0_i32, %c0_i32_0 : i32, i32
  }
  func.func @transform_2(%arg0: i32) -> (i32, i32) {
    %c0_i32 = arith.constant 0 : i32
    %c0_i32_0 = arith.constant 0 : i32
    %c0_i32_1 = arith.constant 0 : i32
    return %c0_i32, %c0_i32_0 : i32, i32
  }
  func.func @transform_3(%arg0: i32) -> (i32, i32) {
    %c0_i32 = arith.constant 0 : i32
    %c0_i32_0 = arith.constant 0 : i32
    return %arg0, %c0_i32 : i32, i32
  }
}

</mosaic_0001>

<bundles_post_ra>
// kernel: tpu_custom_call.1
= control target key start
LH: loop header
LB: loop body
LE: loop exit
PB: predicated region body
PF: predicated region fallthrough
CT: control target
= control target key end

     0   :  { %8 = vsyncpa [#allocation3], 0  ;;  %s530_s0 = inlined_call_operand.hbm [shape: f32[8,128], index: 0, kind: input, shape index: {}]   ;;  %s531_s1 = inlined_call_operand.hbm [shape: f32[128,128], index: 1, kind: input, shape index: {}]   ;;  %s532_s2 = inlined_call_operand.vmem [shape: f32[1,128], index: 2, kind: input, shape index: {}]   ;;  %s533_s3 = inlined_call_operand.hbm [shape: f32[8,128], index: 3, kind: output, shape index: {}]  }
   0x1   :  { %9 = vsyncpa [#allocation6], 0 }
   0x2   :  { %10 = vsyncpa [#allocation4], 0  ;;  %s456_s12 = smov [#allocation2]   ;;  %s457_s14 = smov [#allocation5]  }
   0x3   :  { %s17_s13 = sshll.u32 %s456_s12, 4  ;;  %s26_s15 = sshll.u32 %s457_s14, 4  ;;  %s18_s13 = int_to_ptr.vmem [resolvable:$true] %s17_s13  ;;  %s484_s15 = int_to_ptr.vmem [resolvable:$true] %s26_s15 }
   0x4   :  { %s384_s18 = scalar_lea.hbm %s530_s0, 128 }
   0x5   :  { %p385_p0 = scmp.ne.s32.totalorder %s530_s0, %s384_s18  ;;  %p388_p1 = scmp.lt.u32.totalorder %s384_s18, %s530_s0 }
   0x7   :  { %p390_p2 = pnand %p388_p1, %p385_p0 }
   0x9   :  { %393 = shalt.err (!%p390_p2)
}
   0xa   :  { %s394_s23 = scalar_lea.vmem %s18_s13, 128  ;;  %p399_p4 = scmp.lt.s32.totalorder %s18_s13, %s18_s13 }
   0xb   :  { %p395_p3 = scmp.ne.s32.totalorder %s18_s13, %s394_s23  ;;  %p400_p5 = scmp.lt.s32.totalorder %s394_s23, %s394_s23 }
   0xd   :  { %p401_p6 = por %p400_p5, %p399_p4 }
   0xf   :  { %p402_p7 = pnand %p401_p6, %p395_p3 }
  0x11   :  { %405 = shalt.err (!%p402_p7)
}
  0x12   :  { %20 = dma.hbm_to_vmem [thread:$0]  %s530_s0, 128, %s18_s13, [#allocation3]  }
  0x13   :  { %s406_s28 = scalar_lea.hbm %s531_s1, 2048 }
  0x14   :  { %p407_p8 = scmp.ne.s32.totalorder %s531_s1, %s406_s28  ;;  %p410_p9 = scmp.lt.u32.totalorder %s406_s28, %s531_s1 }
  0x16   :  { %p412_p10 = pnand %p410_p9, %p407_p8 }
  0x18   :  { %415 = shalt.err (!%p412_p10)
}
  0x19   :  { %s416_s6 = scalar_lea.vmem %s484_s15, 2048  ;;  %p421_p12 = scmp.lt.s32.totalorder %s484_s15, %s484_s15 }
  0x1a   :  { %p417_p11 = scmp.ne.s32.totalorder %s484_s15, %s416_s6  ;;  %p422_p13 = scmp.lt.s32.totalorder %s416_s6, %s416_s6 }
  0x1c   :  { %p423_p0 = por %p422_p13, %p421_p12 }
  0x1e   :  { %p424_p1 = pnand %p423_p0, %p417_p11 }
  0x20   :  { %427 = shalt.err (!%p424_p1)
}
  0x21   :  { %s458_s0 = smov 128   ;;  %s459_s7 = smov 8  }
  0x22   :  { %32 = dma.hbm_to_vmem [thread:$0]  %s531_s1, 2048, %s484_s15, [#allocation6], %s458_s0, %s458_s0, %s459_s7  }
  0x23   :  { %450 = dma.done.wait [#allocation3], 128  }
  0x24   :  { %451 = vsyncadd [#allocation3], 4294967168 }
  0x25   :  { %452 = dma.done.wait [#allocation6], 2048  }
  0x26   :  { %453 = vsyncadd [#allocation6], 4294965248  ;;  %v460_v0 = vmov 0.0|0.0   ;;  %vm461_vm0 = vmmov 0   ;;  %v462_v1 = vmov 0.0   ;;  %v42_v2 = vld [vmem:[#allocation5] sm:$0xff] }
  0x27   :  { %328 = vmatprep.subr.bf16.mxu0 %v460_v0  ;;  %290 = vmatprep.mubr.msk.f32.mxu0 %vm461_vm0, %v462_v1  ;;  %v43_v3 = vld [vmem:[#allocation5 + $0x8] sm:$0xff]  ;;  %v44_v4 = vld [vmem:[#allocation5 + $0x10] sm:$0xff]  ;;  %v45_v6 = vld [vmem:[#allocation5 + $0x18] sm:$0xff]  ;;  %s463_s11 = smov [#allocation7]  }
  0x28   :  { %352 = vmatprep.subr.bf16.mxu1 %v460_v0  ;;  %325 = vmatprep.mubr.msk.f32.mxu1 %vm461_vm0, %v462_v1  ;;  %v329_v5 = vpack.c.bf16 %v43_v3, %v42_v2  ;;  %v332_v7 = vpack.c.bf16 %v45_v6, %v44_v4  ;;  %v46_v8 = vld [vmem:[#allocation5 + $0x20] sm:$0xff]  ;;  %v47_v9 = vld [vmem:[#allocation5 + $0x28] sm:$0xff]  ;;  %v48_v11 = vld [vmem:[#allocation5 + $0x30] sm:$0xff]  ;;  %s213_s12 = sshll.u32 %s463_s11, 4  ;;  %s214_s12 = int_to_ptr.vmem [resolvable:$true] %s213_s12 }
  0x29   :  { %v335_v10 = vpack.c.bf16 %v47_v9, %v46_v8  ;;  %v49_v12 = vld [vmem:[#allocation5 + $0x38] sm:$0xff]  ;;  %v50_v14 = vld [vmem:[#allocation5 + $0x40] sm:$0xff]  ;;  %v51_v15 = vld [vmem:[#allocation5 + $0x48] sm:$0xff]  ;;  %s428_s13 = scalar_lea.vmem %s214_s12, 128  ;;  %p433_p3 = scmp.lt.s32.totalorder %s214_s12, %s214_s12 }
  0x2a   :  { %330 = vmatpush3.bf16.msra.mxu0 %v329_v5  ;;  %354 = vmatpush3.bf16.xpose.msra.mxu1 %v329_v5  ;;  %v338_v13 = vpack.c.bf16 %v49_v12, %v48_v11  ;;  %v341_v16 = vpack.c.bf16 %v51_v15, %v50_v14  ;;  %v52_v17 = vld [vmem:[#allocation5 + $0x50] sm:$0xff]  ;;  %v53_v18 = vld [vmem:[#allocation5 + $0x58] sm:$0xff]  ;;  %v54_v20 = vld [vmem:[#allocation5 + $0x60] sm:$0xff]  ;;  %p429_p2 = scmp.ne.s32.totalorder %s214_s12, %s428_s13  ;;  %p434_p4 = scmp.lt.s32.totalorder %s428_s13, %s428_s13 }
  0x2b   :  { %331 = vmatprep.subr.bf16.mxu0 %v460_v0  ;;  %355 = vmatprep.subr.bf16.mxu1 %v460_v0  ;;  %v344_v19 = vpack.c.bf16 %v53_v18, %v52_v17  ;;  %v55_v21 = vld [vmem:[#allocation5 + $0x68] sm:$0xff]  ;;  %v56_v23 = vld [vmem:[#allocation5 + $0x70] sm:$0xff]  ;;  %v57_v24 = vld [vmem:[#allocation5 + $0x78] sm:$0xff] }
  0x2c   :  { %v347_v22 = vpack.c.bf16 %v55_v21, %v54_v20  ;;  %v350_v25 = vpack.c.bf16 %v57_v24, %v56_v23  ;;  %v41_v26 = vld [vmem:[#allocation2] sm:$0xff]  ;;  %p435_p5 = por %p434_p4, %p433_p3 }
  0x2d   :  { %v223_v29 = vld [vmem:[%s532_s2] ss:$0 sm:$0xff] }
  0x2e   :  { %333 = vmatpush3.bf16.msra.mxu0 %v332_v7  ;;  %p436_p6 = pnand %p435_p5, %p429_p2 }
  0x2f   :  { %334 = vmatprep.subr.bf16.mxu0 %v460_v0 }
  0x32   :  { %336 = vmatpush3.bf16.msra.mxu0 %v335_v10  ;;  %357 = vmatpush3.bf16.xpose.msra.mxu1 %v332_v7 }
  0x33   :  { %337 = vmatprep.subr.bf16.mxu0 %v460_v0  ;;  %358 = vmatprep.subr.bf16.mxu1 %v460_v0 }
  0x36   :  { %339 = vmatpush3.bf16.msra.mxu0 %v338_v13 }
  0x37   :  { %340 = vmatprep.subr.bf16.mxu0 %v460_v0 }
  0x3a   :  { %342 = vmatpush3.bf16.msra.mxu0 %v341_v16  ;;  %360 = vmatpush3.bf16.xpose.msra.mxu1 %v335_v10 }
  0x3b   :  { %343 = vmatprep.subr.bf16.mxu0 %v460_v0  ;;  %361 = vmatprep.subr.bf16.mxu1 %v460_v0 }
  0x3e   :  { %345 = vmatpush3.bf16.msra.mxu0 %v344_v19 }
  0x3f   :  { %346 = vmatprep.subr.bf16.mxu0 %v460_v0 }
  0x42   :  { %348 = vmatpush3.bf16.msra.mxu0 %v347_v22  ;;  %363 = vmatpush3.bf16.xpose.msra.mxu1 %v338_v13 }
  0x43   :  { %349 = vmatprep.subr.bf16.mxu0 %v460_v0  ;;  %364 = vmatprep.subr.bf16.mxu1 %v460_v0 }
  0x46   :  { %351 = vmatpush3.bf16.msra.mxu0 %v350_v25 }
  0x49   :  { %291 = vmatmul.mubr.f32.vlgmr.msra.gmra.mrb[0].mxu0 %v41_v26 }
  0x4a   :  { %366 = vmatpush3.bf16.xpose.msra.mxu1 %v341_v16 }
  0x4b   :  { %367 = vmatprep.subr.bf16.mxu1 %v460_v0 }
  0x52   :  { %369 = vmatpush3.bf16.xpose.msra.mxu1 %v344_v19 }
  0x53   :  { %370 = vmatprep.subr.bf16.mxu1 %v460_v0 }
  0x5a   :  { %372 = vmatpush3.bf16.xpose.msra.mxu1 %v347_v22 }
  0x5b   :  { %373 = vmatprep.subr.bf16.mxu1 %v460_v0 }
  0x62   :  { %375 = vmatpush3.bf16.xpose.msra.mxu1 %v350_v25 }
 0x11c   :  { %v124_v27 = vpop.f32.mrb[0].mxu0 }
 0x11d   :  { %v292_v28 = vpop.f32.mrb[1].mxu0  ;;  %326 = vmatmul.mubr.f32.vlgmr.msra.gmra.mrb[0].mxu1 %v124_v27 }
 0x1f0   :  { %v201_v30 = vpop.f32.mrb[0].mxu1 }
 0x1f1   :  { %v202_v31 = vadd.f32 %v223_v29, %v201_v30  ;;  %v327_v32 = vpop.f32.mrb[1].mxu1 }
 0x1f3   :  { %v205_v33 = vmax.f32 %v202_v31, 0.0 }
 0x1f5   :  { %206 = vst [vmem:[#allocation7] sm:$0xff] %v205_v33 }
 0x1f6   :  { %439 = shalt.err (!%p436_p6)
}
 0x1f7   :  { %s440_s16 = scalar_lea.hbm %s533_s3, 128 }
 0x1f8   :  { %p441_p7 = scmp.ne.s32.totalorder %s533_s3, %s440_s16  ;;  %p444_p8 = scmp.lt.u32.totalorder %s440_s16, %s533_s3 }
 0x1fa   :  { %p446_p9 = pnand %p444_p8, %p441_p7 }
 0x1fc   :  { %449 = shalt.err (!%p446_p9)
}
 0x1fd   :  { %216 = dma.vmem_to_hbm [thread:$0]  %s214_s12, 128, %s533_s3, [#allocation4]  }
 0x1fe   :  { %454 = dma.done.wait [#allocation4], 128  }
 0x1ff   :  { %455 = vsyncadd [#allocation4], 4294967168 }
 0x200   :  { %220 = vsyncpa [#allocation3], 1 }
 0x201   :  { %221 = vsyncpa [#allocation6], 1 }
 0x202   :  { %222 = vsyncpa [#allocation4], 1 }

</bundles_post_ra>
